<compile_context>
chip_gen: v7x
topology: tpu7x:2x2x1
jax: 0.10.0
libtpu: 0.0.40
codegen_flags: <defaults>
</compile_context>

<pallas_src>
import jax
import jax.numpy as jnp
from jax.experimental import pallas as pl
from jax.experimental.pallas import tpu as pltpu

_HIDDEN = 128   # hidden_dim of network_block(..., hidden_dim=128)
_LANE = 128     # TPU lane width (used only for VMEM-footprint accounting)


def _round_up(x, m):
    return ((x + m - 1) // m) * m


def _inverse_head_kernel(s_ref, ns_ref, w1s_ref, w1n_ref, b1_ref,
                         w2_ref, b2_ref, o_ref):
    # s:   (TB, state_dim)        ns:  (TB, state_dim)
    # w1s: (state_dim, H)         w1n: (state_dim, H)        b1: (1, H)
    # w2:  (H, n_actions)         b2:  (1, n_actions)
    # o:   (TB, n_actions)   <- stored directly, no padded slab
    wdt = w1s_ref.dtype
    h = jnp.dot(s_ref[...].astype(wdt), w1s_ref[...],
                preferred_element_type=jnp.float32)
    h = h + jnp.dot(ns_ref[...].astype(wdt), w1n_ref[...],
                    preferred_element_type=jnp.float32)
    h = jnp.maximum(h + b1_ref[...].astype(jnp.float32), 0.0)   # bias + ReLU in f32
    y = jnp.dot(h.astype(w2_ref.dtype), w2_ref[...],
                preferred_element_type=jnp.float32)
    o_ref[...] = (y + b2_ref[...].astype(jnp.float32)).astype(o_ref.dtype)


def inverse_model_forward(state, next_state, params, *, block_b=4096,
                          out_dtype=jnp.float32, core_parallel=False):
    """Pallas implementation of InverseModel.forward (encode_states=False).

    Args:
      block_b: batch rows per grid step (sweep 4096..8192 on big batches).
      out_dtype: logits dtype; use jnp.bfloat16 on v5e for a ~2x traffic cut.
      core_parallel: set True on v7x so the batch grid shards across the 2
        TensorCores (verify both cores run in the trace); leave False on
        single-core v5e/v6e.
    """
    w1s = params["w1_state"]
    w1n = params["w1_next"]
    b1 = params["b1"]
    w2 = params["w2"]
    b2 = params["b2"]

    B, state_dim = state.shape
    H = w1s.shape[1]
    n_actions = w2.shape[1]

    tb = min(block_b, B)        # batch tile; full-B when B is small
    grid = (pl.cdiv(B, tb),)

    def batch_spec(feat):
        return pl.BlockSpec((tb, feat), lambda i: (i, 0))

    def resident_spec(shape):
        # Constant block index every step -> fetched once, stays resident.
        return pl.BlockSpec(shape, lambda i: (0, 0))

    # ---- VMEM budget (account for lane padding of narrow blocks) ----------
    in_itm = jnp.dtype(state.dtype).itemsize
    out_itm = jnp.dtype(out_dtype).itemsize
    w_itm = jnp.dtype(w1s.dtype).itemsize
    lane = lambda n: _round_up(max(n, 1), _LANE)
    tile_bytes = (2 * 2 * tb * lane(state_dim) * in_itm     # state + next_state, x2 buffers
                  + 2 * tb * lane(n_actions) * out_itm)     # output, x2 buffers
    weight_bytes = 2 * w_itm * (2 * state_dim * lane(H) + lane(H)
                                + H * lane(n_actions) + lane(n_actions))
    vmem_limit = int(1.25 * (tile_bytes + weight_bytes)) + (4 << 20)
    vmem_limit = max(vmem_limit, 16 << 20)
    vmem_limit = min(vmem_limit, 48 << 20)   # headroom under v7x's 64 MiB physical

    # ---- advisory cost estimate for the XLA scheduler ----------------------
    flops = 4 * B * state_dim * H + 2 * B * H * n_actions
    bytes_accessed = (2 * B * state_dim * in_itm
                      + B * n_actions * out_itm
                      + (2 * state_dim * H + H + H * n_actions + n_actions) * w_itm)

    batch_sem = pltpu.CORE_PARALLEL if core_parallel else pltpu.PARALLEL

    return pl.pallas_call(
        _inverse_head_kernel,
        out_shape=jax.ShapeDtypeStruct((B, n_actions), out_dtype),
        grid=grid,
        in_specs=[
            batch_spec(state_dim),            # state
            batch_spec(state_dim),            # next_state
            resident_spec((state_dim, H)),    # w1_state
            resident_spec((state_dim, H)),    # w1_next
            resident_spec((1, H)),            # b1
            resident_spec((H, n_actions)),    # w2 (unpadded)
            resident_spec((1, n_actions)),    # b2 (unpadded)
        ],
        out_specs=pl.BlockSpec((tb, n_actions), lambda i: (i, 0)),
        compiler_params=pltpu.CompilerParams(
            dimension_semantics=(batch_sem,),
            vmem_limit_bytes=vmem_limit,
        ),
        cost_estimate=pl.CostEstimate(flops=flops, transcendentals=0,
                                      bytes_accessed=bytes_accessed),
    )(state, next_state, w1s, w1n, b1, w2, b2)


def init_params(key, state_dim, n_actions, hidden_dim=_HIDDEN, dtype=jnp.float32):
    """PyTorch-Linear-style init: U(-1/sqrt(fan_in), 1/sqrt(fan_in)).

    W1 is stored pre-split (state / next_state halves) so the kernel never
    needs a (B, 2*state_dim) concat.  Set dtype=jnp.bfloat16 for the
    bandwidth-bound path (esp. v5e); biases stay f32 (added post-MXU).
    """
    k1, k2, k3, k4 = jax.random.split(key, 4)
    fan_in1 = 2 * state_dim
    bnd1 = 1.0 / (fan_in1 ** 0.5)
    bnd2 = 1.0 / (hidden_dim ** 0.5)

    w1 = jax.random.uniform(k1, (fan_in1, hidden_dim), jnp.float32, -bnd1, bnd1)
    b1 = jax.random.uniform(k2, (1, hidden_dim), jnp.float32, -bnd1, bnd1)
    w2 = jax.random.uniform(k3, (hidden_dim, n_actions), jnp.float32, -bnd2, bnd2)
    b2 = jax.random.uniform(k4, (1, n_actions), jnp.float32, -bnd2, bnd2)

    return dict(
        w1_state=w1[:state_dim].astype(dtype),
        w1_next=w1[state_dim:].astype(dtype),
        b1=b1,
        w2=w2.astype(dtype),
        b2=b2,
        n_actions=n_actions,
    )


def _reference_forward(state, next_state, params):
    """Pure-JAX reference for correctness check."""
    w1s = params["w1_state"].astype(jnp.float32)
    w1n = params["w1_next"].astype(jnp.float32)
    b1 = params["b1"]
    w2 = params["w2"].astype(jnp.float32)
    b2 = params["b2"]
    h = jnp.maximum(state @ w1s + next_state @ w1n + b1, 0.0)
    return h @ w2 + b2


if __name__ == "__main__":
    batch = 8
    state_dim = 16
    n_actions = 6

    key = jax.random.PRNGKey(0)
    kp, ks, kn = jax.random.split(key, 3)

    params = init_params(kp, state_dim, n_actions)
    state = jax.random.normal(ks, (batch, state_dim), jnp.float32)
    next_state = jax.random.normal(kn, (batch, state_dim), jnp.float32)

    out = inverse_model_forward(state, next_state, params)
    out = jax.block_until_ready(out)

    ref = _reference_forward(state, next_state, params)
    assert out.shape == (batch, n_actions)
    assert jnp.allclose(out, ref, atol=1e-5, rtol=1e-5)

    print("KERNEL_OK")
</pallas_src>

<mosaic_0001>
module attributes {stable_mosaic.version = 11 : i64} {
  func.func @_inverse_head_kernel(%arg0: i32, %arg1: memref<8x16xf32, #tpu.memory_space<vmem>>, %arg2: memref<8x16xf32, #tpu.memory_space<vmem>>, %arg3: memref<16x128xf32, #tpu.memory_space<vmem>>, %arg4: memref<16x128xf32, #tpu.memory_space<vmem>>, %arg5: memref<1x128xf32, #tpu.memory_space<vmem>>, %arg6: memref<128x6xf32, #tpu.memory_space<vmem>>, %arg7: memref<1x6xf32, #tpu.memory_space<vmem>>, %arg8: memref<8x6xf32, #tpu.memory_space<vmem>>) attributes {dimension_semantics = [#tpu.dimension_semantics<parallel>], iteration_bounds = array<i64: 1>, scalar_prefetch = 0 : i64, scratch_operands = 0 : i64, tpu.core_type = #tpu.core_type<tc>, window_params = [{transform_indices = @transform_0, window_bounds = array<i64: 8, 16>}, {transform_indices = @transform_1, window_bounds = array<i64: 8, 16>}, {pipeline_mode = #tpu.pipeline_mode<synchronous>, transform_indices = @transform_2, window_bounds = array<i64: 16, 128>}, {pipeline_mode = #tpu.pipeline_mode<synchronous>, transform_indices = @transform_3, window_bounds = array<i64: 16, 128>}, {pipeline_mode = #tpu.pipeline_mode<synchronous>, transform_indices = @transform_4, window_bounds = array<i64: 1, 128>}, {pipeline_mode = #tpu.pipeline_mode<synchronous>, transform_indices = @transform_5, window_bounds = array<i64: 128, 6>}, {pipeline_mode = #tpu.pipeline_mode<synchronous>, transform_indices = @transform_6, window_bounds = array<i64: 1, 6>}, {transform_indices = @transform_7, window_bounds = array<i64: 8, 6>}]} {
    %c0 = arith.constant 0 : index
    %c0_0 = arith.constant 0 : index
    %0 = vector.load %arg1[%c0, %c0_0] : memref<8x16xf32, #tpu.memory_space<vmem>>, vector<8x16xf32>
    %c0_1 = arith.constant 0 : index
    %c0_2 = arith.constant 0 : index
    %1 = vector.load %arg3[%c0_1, %c0_2] : memref<16x128xf32, #tpu.memory_space<vmem>>, vector<16x128xf32>
    %cst = arith.constant dense<0.000000e+00> : vector<8x128xf32>
    %2 = tpu.matmul %0, %1, %cst {dimension_numbers = #tpu.dot_dimension_numbers<[1], [0], [0], [1], [0, 0, 1, 1], [], []>} : vector<8x16xf32>, vector<16x128xf32>, vector<8x128xf32> -> vector<8x128xf32>
    %c0_3 = arith.constant 0 : index
    %c0_4 = arith.constant 0 : index
    %3 = vector.load %arg2[%c0_3, %c0_4] : memref<8x16xf32, #tpu.memory_space<vmem>>, vector<8x16xf32>
    %c0_5 = arith.constant 0 : index
    %c0_6 = arith.constant 0 : index
    %4 = vector.load %arg4[%c0_5, %c0_6] : memref<16x128xf32, #tpu.memory_space<vmem>>, vector<16x128xf32>
    %cst_7 = arith.constant dense<0.000000e+00> : vector<8x128xf32>
    %5 = tpu.matmul %3, %4, %cst_7 {dimension_numbers = #tpu.dot_dimension_numbers<[1], [0], [0], [1], [0, 0, 1, 1], [], []>} : vector<8x16xf32>, vector<16x128xf32>, vector<8x128xf32> -> vector<8x128xf32>
    %6 = arith.addf %2, %5 : vector<8x128xf32>
    %c0_8 = arith.constant 0 : index
    %c0_9 = arith.constant 0 : index
    %7 = vector.load %arg5[%c0_8, %c0_9] : memref<1x128xf32, #tpu.memory_space<vmem>>, vector<1x128xf32>
    %8 = vector.broadcast %7 : vector<1x128xf32> to vector<8x128xf32>
    %9 = arith.addf %6, %8 : vector<8x128xf32>
    %cst_10 = arith.constant 0.000000e+00 : f32
    %10 = vector.broadcast %cst_10 : f32 to vector<8x128xf32>
    %11 = arith.maximumf %9, %10 : vector<8x128xf32>
    %c0_11 = arith.constant 0 : index
    %c0_12 = arith.constant 0 : index
    %12 = vector.load %arg6[%c0_11, %c0_12] : memref<128x6xf32, #tpu.memory_space<vmem>>, vector<128x6xf32>
    %cst_13 = arith.constant dense<0.000000e+00> : vector<8x6xf32>
    %13 = tpu.matmul %11, %12, %cst_13 {dimension_numbers = #tpu.dot_dimension_numbers<[1], [0], [0], [1], [0, 0, 1, 1], [], []>} : vector<8x128xf32>, vector<128x6xf32>, vector<8x6xf32> -> vector<8x6xf32>
    %c0_14 = arith.constant 0 : index
    %c0_15 = arith.constant 0 : index
    %14 = vector.load %arg7[%c0_14, %c0_15] : memref<1x6xf32, #tpu.memory_space<vmem>>, vector<1x6xf32>
    %15 = vector.broadcast %14 : vector<1x6xf32> to vector<8x6xf32>
    %16 = arith.addf %13, %15 : vector<8x6xf32>
    %c0_16 = arith.constant 0 : index
    %c0_17 = arith.constant 0 : index
    %17 = vector.load %arg8[%c0_16, %c0_17] : memref<8x6xf32, #tpu.memory_space<vmem>>, vector<8x6xf32>
    tpu.vector_store %arg8[%c0_16, %c0_17], %16 {strides = array<i32>} : memref<8x6xf32, #tpu.memory_space<vmem>>, vector<8x6xf32>,
    return
  }
  func.func @transform_0(%arg0: i32) -> (i32, i32) {
    %c0_i32 = arith.constant 0 : i32
    %c0_i32_0 = arith.constant 0 : i32
    return %arg0, %c0_i32 : i32, i32
  }
  func.func @transform_1(%arg0: i32) -> (i32, i32) {
    %c0_i32 = arith.constant 0 : i32
    %c0_i32_0 = arith.constant 0 : i32
    return %arg0, %c0_i32 : i32, i32
  }
  func.func @transform_2(%arg0: i32) -> (i32, i32) {
    %c0_i32 = arith.constant 0 : i32
    %c0_i32_0 = arith.constant 0 : i32
    %c0_i32_1 = arith.constant 0 : i32
    return %c0_i32, %c0_i32_0 : i32, i32
  }
  func.func @transform_3(%arg0: i32) -> (i32, i32) {
    %c0_i32 = arith.constant 0 : i32
    %c0_i32_0 = arith.constant 0 : i32
    %c0_i32_1 = arith.constant 0 : i32
    return %c0_i32, %c0_i32_0 : i32, i32
  }
  func.func @transform_4(%arg0: i32) -> (i32, i32) {
    %c0_i32 = arith.constant 0 : i32
    %c0_i32_0 = arith.constant 0 : i32
    %c0_i32_1 = arith.constant 0 : i32
    return %c0_i32, %c0_i32_0 : i32, i32
  }
  func.func @transform_5(%arg0: i32) -> (i32, i32) {
    %c0_i32 = arith.constant 0 : i32
    %c0_i32_0 = arith.constant 0 : i32
    %c0_i32_1 = arith.constant 0 : i32
    return %c0_i32, %c0_i32_0 : i32, i32
  }
  func.func @transform_6(%arg0: i32) -> (i32, i32) {
    %c0_i32 = arith.constant 0 : i32
    %c0_i32_0 = arith.constant 0 : i32
    %c0_i32_1 = arith.constant 0 : i32
    return %c0_i32, %c0_i32_0 : i32, i32
  }
  func.func @transform_7(%arg0: i32) -> (i32, i32) {
    %c0_i32 = arith.constant 0 : i32
    %c0_i32_0 = arith.constant 0 : i32
    return %arg0, %c0_i32 : i32, i32
  }
}

</mosaic_0001>

<bundles_post_ra>
// kernel: tpu_custom_call.1
= control target key start
LH: loop header
LB: loop body
LE: loop exit
PB: predicated region body
PF: predicated region fallthrough
CT: control target
= control target key end

     0   :  { %v432_v2 = vmov 0.0|0.0   ;;  %vm433_vm0 = vmmov 0   ;;  %v434_v4 = vmov 0.0   ;;  %vm33_vm1 = vcmask 130048   ;;  %s565_s0 = inlined_call_operand.vmem [shape: f32[8,16], index: 0, kind: input, shape index: {}]   ;;  %s566_s1 = inlined_call_operand.vmem [shape: f32[8,16], index: 1, kind: input, shape index: {}]   ;;  %s567_s2 = inlined_call_operand.vmem [shape: f32[16,128], index: 2, kind: input, shape index: {}]   ;;  %s568_s3 = inlined_call_operand.vmem [shape: f32[16,128], index: 3, kind: input, shape index: {}]   ;;  %s569_s4 = inlined_call_operand.vmem [shape: f32[1,128], index: 4, kind: input, shape index: {}]   ;;  %s570_s5 = inlined_call_operand.vmem [shape: f32[128,6], index: 5, kind: input, shape index: {}]   ;;  %s571_s6 = inlined_call_operand.vmem [shape: f32[1,6], index: 6, kind: input, shape index: {}]   ;;  %s572_s7 = inlined_call_operand.hbm [shape: f32[8,6], index: 7, kind: output, shape index: {}]  }
   0x1   :  { %v31_v0 = vld [vmem:[%s568_s3] sm:$0xff]  ;;  %v32_v1 = vld [vmem:[%s568_s3 + $0x8] sm:$0xff]  ;;  %374 = vmatprep.subr.bf16.mxu1 %v432_v2  ;;  %329 = vmatprep.mubr.msk.f32.mxu1 %vm433_vm0, %v434_v4  ;;  %v191_v9 = vld [vmem:[%s570_s5 + $0x10] sm:$0xff] }
   0x2   :  { %v375_v3 = vpack.c.bf16 %v32_v1, %v31_v0  ;;  %v28_v5 = vld [vmem:[%s567_s2] sm:$0xff]  ;;  %v29_v6 = vld [vmem:[%s567_s2 + $0x8] sm:$0xff]  ;;  %380 = vmatprep.subr.bf16.mxu0 %v432_v2  ;;  %371 = vmatprep.mubr.msk.f32.mxu0 %vm433_vm0, %v434_v4  ;;  %v192_v13 = vld [vmem:[%s570_s5 + $0x18] sm:$0xff] }
   0x3   :  { %v189_v7 = vld [vmem:[%s570_s5] sm:$0xff]  ;;  %v190_v8 = vld [vmem:[%s570_s5 + $0x8] sm:$0xff]  ;;  %v378_v11 = vpack.c.bf16 %v29_v6, %v28_v5  ;;  %v384_v14 = vpack.c.bf16 %v192_v13, %v191_v9 }
   0x4   :  { %376 = vmatpush3.bf16.msra.mxu1 %v375_v3  ;;  %v30_v10 = vld [vmem:[%s566_s1] sm:$0xff]  ;;  %v381_v12 = vpack.c.bf16 %v190_v8, %v189_v7 }
   0x5   :  { %377 = vmatprep.subr.bf16.mxu1 %v432_v2 }
   0x6   :  { %382 = vmatpush3.bf16.msra.mxu0 %v381_v12 }
   0x7   :  { %12 = vsyncpa [#allocation3], 0  ;;  %330 = vmatmul.mubr.msk.f32.vlgmr.msra.gmra.mrb[0].mxu1 %vm33_vm1, %v30_v10  ;;  %383 = vmatprep.subr.bf16.mxu0 %v432_v2  ;;  %v193_v15 = vld [vmem:[%s570_s5 + $0x20] sm:$0xff]  ;;  %v194_v16 = vld [vmem:[%s570_s5 + $0x28] sm:$0xff]  ;;  %s435_s1 = smov [#allocation2]   ;;  %vm282_vm2 = vcmask 48128  }
   0x8   :  { %379 = vmatpush3.bf16.msra.mxu1 %v378_v11  ;;  %336 = vmatprep.mubr.msk.f32.mxu1 %vm433_vm0, %v434_v4  ;;  %v27_v17 = vld [vmem:[%s565_s0] sm:$0xff]  ;;  %v387_v18 = vpack.c.bf16 %v194_v16, %v193_v15  ;;  %v195_v19 = vld [vmem:[%s570_s5 + $0x30] sm:$0xff]  ;;  %v196_v20 = vld [vmem:[%s570_s5 + $0x38] sm:$0xff] }
   0x9   :  { %v390_v21 = vpack.c.bf16 %v196_v20, %v195_v19  ;;  %v197_v22 = vld [vmem:[%s570_s5 + $0x40] sm:$0xff]  ;;  %v198_v23 = vld [vmem:[%s570_s5 + $0x48] sm:$0xff]  ;;  %v199_v25 = vld [vmem:[%s570_s5 + $0x50] sm:$0xff] }
   0xa   :  { %385 = vmatpush3.bf16.msra.mxu0 %v384_v14  ;;  %v393_v24 = vpack.c.bf16 %v198_v23, %v197_v22  ;;  %v200_v26 = vld [vmem:[%s570_s5 + $0x58] sm:$0xff]  ;;  %v201_v28 = vld [vmem:[%s570_s5 + $0x60] sm:$0xff]  ;;  %v202_v29 = vld [vmem:[%s570_s5 + $0x68] sm:$0xff] }
   0xb   :  { %337 = vmatmul.mubr.msk.f32.vlgmr.msra.gmra.mrb[2].mxu1 %vm33_vm1, %v27_v17  ;;  %386 = vmatprep.subr.bf16.mxu0 %v432_v2  ;;  %v396_v27 = vpack.c.bf16 %v200_v26, %v199_v25  ;;  %v399_v30 = vpack.c.bf16 %v202_v29, %v201_v28  ;;  %v203_v31 = vld [vmem:[%s570_s5 + $0x70] sm:$0xff]  ;;  %v204_v32 = vld [vmem:[%s570_s5 + $0x78] sm:$0xff]  ;;  %v300_v37 = vld [vmem:[%s569_s4] ss:$0 sm:$0xff]  ;;  %s290_s5 = sshll.u32 %s435_s1, 4  ;;  %s291_s5 = int_to_ptr.vmem [resolvable:$true] %s290_s5 }
   0xc   :  { %v402_v33 = vpack.c.bf16 %v204_v32, %v203_v31  ;;  %v301_v42 = vld [vmem:[%s571_s6] ss:$0 sm:$0xff]  ;;  %s408_s20 = scalar_lea.vmem %s291_s5, 128  ;;  %p413_p1 = scmp.lt.s32.totalorder %s291_s5, %s291_s5 }
   0xd   :  { %p409_p0 = scmp.ne.s32.totalorder %s291_s5, %s408_s20  ;;  %p414_p2 = scmp.lt.s32.totalorder %s408_s20, %s408_s20 }
   0xe   :  { %388 = vmatpush3.bf16.msra.mxu0 %v387_v18 }
   0xf   :  { %389 = vmatprep.subr.bf16.mxu0 %v432_v2  ;;  %p415_p3 = por %p414_p2, %p413_p1 }
  0x11   :  { %p416_p4 = pnand %p415_p3, %p409_p0 }
  0x12   :  { %391 = vmatpush3.bf16.msra.mxu0 %v390_v21 }
  0x13   :  { %392 = vmatprep.subr.bf16.mxu0 %v432_v2 }
  0x16   :  { %394 = vmatpush3.bf16.msra.mxu0 %v393_v24 }
  0x17   :  { %395 = vmatprep.subr.bf16.mxu0 %v432_v2 }
  0x1a   :  { %397 = vmatpush3.bf16.msra.mxu0 %v396_v27 }
  0x1b   :  { %398 = vmatprep.subr.bf16.mxu0 %v432_v2 }
  0x1e   :  { %400 = vmatpush3.bf16.msra.mxu0 %v399_v30 }
  0x1f   :  { %401 = vmatprep.subr.bf16.mxu0 %v432_v2 }
  0x22   :  { %403 = vmatpush3.bf16.msra.mxu0 %v402_v33 }
  0xda   :  { %v103_v34 = vpop.f32.mrb[0].mxu1 }
  0xdb   :  { %v331_v35 = vpop.f32.mrb[1].mxu1 }
  0xde   :  { %v176_v36 = vpop.f32.mrb[2].mxu1 }
  0xdf   :  { %v177_v38 = vadd.f32 %v176_v36, %v103_v34  ;;  %v338_v39 = vpop.f32.mrb[3].mxu1 }
  0xe1   :  { %v187_v40 = vadd.f32 %v300_v37, %v177_v38 }
  0xe3   :  { %v188_v41 = vmax.f32 %v187_v40, 0.0 }
  0xe5   :  { %372 = vmatmul.mubr.f32.vlgmr.msra.gmra.mrb[0].mxu0 %v188_v41 }
 0x1b8   :  { %v278_v43 = vpop.f32.mrb[0].mxu0 }
 0x1b9   :  { %v279_v44 = vadd.f32 %v301_v42, %v278_v43  ;;  %v373_v45 = vpop.f32.mrb[1].mxu0 }
 0x1bb   :  { %283 = vst.msk [vmem:[#allocation2] sm:$0xff] %vm282_vm2, %v279_v44 }
 0x1bc   :  { %419 = shalt.err (!%p416_p4)
}
 0x1bd   :  { %s420_s22 = scalar_lea.hbm %s572_s7, 128 }
 0x1be   :  { %p421_p5 = scmp.ne.s32.totalorder %s572_s7, %s420_s22  ;;  %p424_p6 = scmp.lt.u32.totalorder %s420_s22, %s572_s7 }
 0x1c0   :  { %p426_p7 = pnand %p424_p6, %p421_p5 }
 0x1c2   :  { %429 = shalt.err (!%p426_p7)
}
 0x1c3   :  { %293 = dma.vmem_to_hbm [thread:$0]  %s291_s5, 128, %s572_s7, [#allocation3]  }
 0x1c4   :  { %430 = dma.done.wait [#allocation3], 128  }
 0x1c5   :  { %431 = vsyncadd [#allocation3], 4294967168 }
 0x1c6   :  { %297 = vsyncpa [#allocation3], 1 }

</bundles_post_ra>
